<compile_context>
chip_gen: v5e
topology: v5e:2x2
jax: 0.10.0
libtpu: 0.0.40
codegen_flags: <defaults>
</compile_context>

<pallas_src>
import numpy as np

import jax
import jax.numpy as jnp
from jax.experimental import pallas as pl
from jax.experimental.pallas import tpu as pltpu


LANE = 128
SUBLANE = 8
MIN_BUCKET = LANE * SUBLANE        # 1024: keeps R = S_pad/128 a multiple of 8
MAX_BLOCK_ROWS = 2048              # 2048x128 int32 block = 1 MiB tokens / step


def _bucket(s):
    """Coarse power-of-two bucket (>= 1024) to avoid per-length recompiles."""
    b = MIN_BUCKET
    while b < s:
        b *= 2
    return b


# ----------------------------------------------------------------------------
# Pallas kernel: fused "token in alignment_idx" membership mask
# ----------------------------------------------------------------------------
def bottom_abstract_kernel(align_ref, len_ref, tokens_ref, mask_ref):
    """align_ref:  SMEM (K,)  int32 alignment ids   (scalar-prefetch operand)
       len_ref:    SMEM (1,)  int32 valid length    (scalar-prefetch operand)
       tokens_ref: VMEM (block_rows, 128) int32 token ids (padding = -1)
       mask_ref:   VMEM (block_rows, 128) int8 membership mask output."""
    toks = tokens_ref[...]                                         # (rows, 128)
    blk_rows, lanes = toks.shape

    # Global flat position of each element of this block.
    base = pl.program_id(0) * (blk_rows * lanes)
    row = jax.lax.broadcasted_iota(jnp.int32, toks.shape, 0)
    lane = jax.lax.broadcasted_iota(jnp.int32, toks.shape, 1)
    pos = base + row * lanes + lane
    valid = pos < len_ref[0]

    # Membership test: up to 4 independent accumulators so compares/ORs pack
    # into the 4 VALU slots, then a short OR-tree.
    k = align_ref.shape[0]
    align_vals = [align_ref[i] for i in range(k)]                  # SMEM scalars
    n_acc = min(4, k)
    accs = [toks == align_vals[i] for i in range(n_acc)]
    for i in range(n_acc, k):
        accs[i % n_acc] = jnp.logical_or(accs[i % n_acc], toks == align_vals[i])
    acc = accs[0]
    for a in accs[1:]:
        acc = jnp.logical_or(acc, a)

    mask_ref[...] = jnp.logical_and(acc, valid).astype(jnp.int8)


@jax.jit
def _bottom_mask_call(align, length, tokens_tiled):
    r, lanes = tokens_tiled.shape                    # static inside the trace
    block_rows = min(r, MAX_BLOCK_ROWS)
    grid = (r // block_rows,)
    return pl.pallas_call(
        bottom_abstract_kernel,
        out_shape=jax.ShapeDtypeStruct((r, lanes), jnp.int8),
        grid_spec=pltpu.PrefetchScalarGridSpec(
            num_scalar_prefetch=2,                   # align ids + valid length
            grid=grid,
            in_specs=[
                pl.BlockSpec((block_rows, lanes), lambda i, a, l: (i, 0)),
            ],
            out_specs=pl.BlockSpec((block_rows, lanes), lambda i, a, l: (i, 0)),
        ),
        compiler_params=pltpu.CompilerParams(
            dimension_semantics=("parallel",)),
    )(align, length, tokens_tiled)


def compute_bottom_mask(tokens_row, align_ids):
    """tokens_row: (S,) int token ids (numpy or jax); align_ids: (K,) int32
    device array (K >= 1).  Returns a (R, 128) int8 device mask."""
    tokens_np = np.asarray(tokens_row, dtype=np.int32).reshape(-1)
    s = int(tokens_np.shape[0])
    s_pad = _bucket(s)
    r = s_pad // LANE
    toks = np.full((s_pad,), -1, np.int32)           # host-side pad, one H2D
    toks[:s] = tokens_np
    toks = toks.reshape(r, LANE)
    length = np.asarray([s], np.int32)
    return _bottom_mask_call(align_ids, length, toks)


# ----------------------------------------------------------------------------
# Module wrapper with the torch-like forward semantics
# ----------------------------------------------------------------------------
class BottomAbstratorPallas:
    def __init__(self, alignment_idx):
        # alignment_idx: iterable of token ids whose positions become spans
        self.alignment_idx = list(alignment_idx)
        self._align_arr = jnp.asarray(
            self.alignment_idx if self.alignment_idx else [0], jnp.int32)

    def forward(self, x):
        """x: (B, S) integer array; mirrors torch: only x[0] is used.
        Returns list of [position, position] spans for aligned tokens."""
        x_np = np.asarray(x)                          # works for jax & numpy
        tokens_row = x_np[0]
        s = int(tokens_row.shape[0])
        if s == 0 or len(self.alignment_idx) == 0:
            return []
        mask_dev = compute_bottom_mask(tokens_row, self._align_arr)
        # device_get synchronizes; no extra block_until_ready needed here.
        mask_np = np.asarray(jax.device_get(mask_dev)).reshape(-1)[:s]
        # TODO(synk): span-list construction is symbolic Python output (no tensor
        # equivalent); built host-side from the single kernel-produced mask.
        return [[int(p), int(p)] for p in np.nonzero(mask_np)[0]]

    __call__ = forward


# ----------------------------------------------------------------------------
# Demo / self-check
# ----------------------------------------------------------------------------
if __name__ == "__main__":
    key = jax.random.PRNGKey(0)

    batch, seq_len, vocab = 1, 8, 16
    alignment_idx = [2, 5, 7, 11]

    # deterministic synthetic token batch
    x = jax.random.randint(key, (batch, seq_len), 0, vocab, dtype=jnp.int32)

    module = BottomAbstratorPallas(alignment_idx)
    bottom_span = module.forward(x)

    # pure-Python reference (mirrors the torch module exactly)
    x_np = np.asarray(jax.device_get(x))
    ref_span = [[p, p] for p, tok in enumerate(x_np[0]) if int(tok) in alignment_idx]
    assert bottom_span == ref_span, (bottom_span, ref_span)

    # run the kernel once directly and block on the raw device output
    mask_dev = compute_bottom_mask(x_np[0], module._align_arr)
    jax.block_until_ready(mask_dev)
    mask_host = np.asarray(jax.device_get(mask_dev)).reshape(-1)[:seq_len]
    ref_mask = np.array([1 if int(t) in alignment_idx else 0 for t in x_np[0]],
                        dtype=np.int8)
    assert np.array_equal(mask_host, ref_mask), (mask_host, ref_mask)

    print("KERNEL_OK")
</pallas_src>

<mosaic_0001>
module attributes {stable_mosaic.version = 11 : i64} {
  func.func @bottom_abstract_kernel(%arg0: i32, %arg1: memref<4xi32, #tpu.memory_space<smem>>, %arg2: memref<1xi32, #tpu.memory_space<smem>>, %arg3: memref<8x128xi32, #tpu.memory_space<vmem>>, %arg4: memref<8x128xi8, #tpu.memory_space<vmem>>) attributes {dimension_semantics = [#tpu.dimension_semantics<parallel>], iteration_bounds = array<i64: 1>, scalar_prefetch = 2 : i64, scratch_operands = 0 : i64, tpu.core_type = #tpu.core_type<tc>, window_params = [{transform_indices = @transform_0, window_bounds = array<i64: 8, 128>}, {transform_indices = @transform_1, window_bounds = array<i64: 8, 128>}]} {
    %c0 = arith.constant 0 : index
    %c0_0 = arith.constant 0 : index
    %0 = vector.load %arg3[%c0, %c0_0] : memref<8x128xi32, #tpu.memory_space<vmem>>, vector<8x128xi32>
    %c1024_i32 = arith.constant 1024 : i32
    %1 = arith.muli %arg0, %c1024_i32 : i32
    %2 = tpu.iota {dimensions = array<i32: 0>} : vector<8x128xi32>
    %3 = tpu.iota {dimensions = array<i32: 1>} : vector<8x128xi32>
    %c128_i32 = arith.constant 128 : i32
    %4 = vector.broadcast %c128_i32 : i32 to vector<8x128xi32>
    %5 = arith.muli %2, %4 : vector<8x128xi32>
    %6 = vector.broadcast %1 : i32 to vector<8x128xi32>
    %7 = arith.addi %6, %5 : vector<8x128xi32>
    %8 = arith.addi %7, %3 : vector<8x128xi32>
    %c0_1 = arith.constant 0 : index
    %9 = memref.load %arg2[%c0_1] : memref<1xi32, #tpu.memory_space<smem>>
    %10 = vector.broadcast %9 : i32 to vector<8x128xi32>
    %11 = arith.cmpi slt, %8, %10 : vector<8x128xi32>
    %c0_2 = arith.constant 0 : index
    %12 = memref.load %arg1[%c0_2] : memref<4xi32, #tpu.memory_space<smem>>
    %c1 = arith.constant 1 : index
    %13 = memref.load %arg1[%c1] : memref<4xi32, #tpu.memory_space<smem>>
    %c2 = arith.constant 2 : index
    %14 = memref.load %arg1[%c2] : memref<4xi32, #tpu.memory_space<smem>>
    %c3 = arith.constant 3 : index
    %15 = memref.load %arg1[%c3] : memref<4xi32, #tpu.memory_space<smem>>
    %16 = vector.broadcast %12 : i32 to vector<8x128xi32>
    %17 = arith.cmpi eq, %0, %16 : vector<8x128xi32>
    %18 = vector.broadcast %13 : i32 to vector<8x128xi32>
    %19 = arith.cmpi eq, %0, %18 : vector<8x128xi32>
    %20 = vector.broadcast %14 : i32 to vector<8x128xi32>
    %21 = arith.cmpi eq, %0, %20 : vector<8x128xi32>
    %22 = vector.broadcast %15 : i32 to vector<8x128xi32>
    %23 = arith.cmpi eq, %0, %22 : vector<8x128xi32>
    %24 = arith.ori %17, %19 : vector<8x128xi1>
    %25 = arith.ori %24, %21 : vector<8x128xi1>
    %26 = arith.ori %25, %23 : vector<8x128xi1>
    %27 = arith.andi %26, %11 : vector<8x128xi1>
    %28 = arith.extui %27 : vector<8x128xi1> to vector<8x128xi8>
    %c0_3 = arith.constant 0 : index
    %c0_4 = arith.constant 0 : index
    %29 = vector.load %arg4[%c0_3, %c0_4] : memref<8x128xi8, #tpu.memory_space<vmem>>, vector<8x128xi8>
    tpu.vector_store %arg4[%c0_3, %c0_4], %28 {strides = array<i32>} : memref<8x128xi8, #tpu.memory_space<vmem>>, vector<8x128xi8>,
    return
  }
  func.func @transform_0(%arg0: i32, %arg1: memref<4xi32, #tpu.memory_space<smem>>, %arg2: memref<1xi32, #tpu.memory_space<smem>>) -> (i32, i32) {
    %c0_i32 = arith.constant 0 : i32
    %c0_i32_0 = arith.constant 0 : i32
    return %arg0, %c0_i32 : i32, i32
  }
  func.func @transform_1(%arg0: i32, %arg1: memref<4xi32, #tpu.memory_space<smem>>, %arg2: memref<1xi32, #tpu.memory_space<smem>>) -> (i32, i32) {
    %c0_i32 = arith.constant 0 : i32
    %c0_i32_0 = arith.constant 0 : i32
    return %arg0, %c0_i32 : i32, i32
  }
}

</mosaic_0001>

<bundles_post_ra>
// kernel: _bottom_mask_call.1
= control target key start
LH: loop header
LB: loop body
LE: loop exit
PB: predicated region body
PF: predicated region fallthrough
CT: control target
= control target key end

     0   :  { %s162_s15 = smov [#allocation3]   ;;  %s198_s0 = inlined_call_operand.vmem [shape: s32[4], index: 0, kind: input, shape index: {}]   ;;  %s199_s1 = inlined_call_operand.<no memory space> [shape: s32[1], index: 1, kind: input, shape index: {}]   ;;  %s200_s2 = inlined_call_operand.hbm [shape: s32[8,128], index: 2, kind: input, shape index: {}]   ;;  %s201_s3 = inlined_call_operand.hbm [shape: s8[8,128], index: 3, kind: output, shape index: {}]  }
   0x1   :  { %s9_s14 = sshll.u32 %s198_s0, 4  ;;  %s10_s14 = int_to_ptr.vmem [resolvable:$true] %s9_s14 }
   0x2   :  { %12 = dma.vmem_to_smem %s10_s14, 16, %s162_s15, [#allocation2] }
   0x3   :  { %156 = dma.done.wait [#allocation2], 16 }
   0x4   :  { %157 = vsyncadd [#allocation2], 4294967280 }
   0x5   :  { %16 = sfence }
   0x6   :  { %17 = vsyncpa [#allocation6], 0 }
   0x7   :  { %18 = vsyncpa [#allocation7], 0  ;;  %s24_s18 = sshll.u32 %s200_s2, 4  ;;  %s163_s19 = smov [#allocation5]   ;;  %s25_s18 = int_to_ptr.hbm [resolvable:$true] %s24_s18 }
   0x8   :  { %s26_s20 = sshll.u32 %s163_s19, 4  ;;  %s27_s20 = int_to_ptr.vmem [resolvable:$true] %s26_s20 }
   0x9   :  { %29 = dma.hbm_to_vmem [thread:$0]  %s25_s18, 128, %s27_s20, [#allocation6]  }
   0xa   :  { %158 = dma.done.wait [#allocation6], 128  }
   0xb   :  { %159 = vsyncadd [#allocation6], 4294967168  ;;  %v38_v0 = vlaneseq  ;;  %s49_s0 = sld [smem:[#allocation3]]  ;;  %v36_v5 = vld [vmem:[#allocation5] sm:$0xff]  ;;  %v47_v6 = vstv %s199_s1  ;;  %v164_v11 = vmov 0   ;;  %s165_s2 = smov [#allocation8]  }
   0xc   :  { %s89_s21 = sld [smem:[#allocation3 + $0x1]]  ;;  %s77_s26 = sshll.u32 %s165_s2, 4  ;;  %s78_s26 = int_to_ptr.vmem [resolvable:$true] %s77_s26 }
   0xd   :  { %v39_v1 = vshrl.u32 %v38_v0, 7  ;;  %v41_v2 = vand.u32 127, %v38_v0  ;;  %s90_s22 = sld [smem:[#allocation3 + $0x2]]  ;;  %s79_s28 = sshll.u32 %s201_s3, 4  ;;  %s80_s28 = int_to_ptr.hbm [resolvable:$true] %s79_s28 }
   0xe   :  { %s91_s23 = sld [smem:[#allocation3 + $0x3]] }
   0xf   :  { %v42_v3 = vmul.u32 128, %v39_v1 }
  0x11   :  { %v45_v4 = vadd.s32 %v42_v3, %v41_v2  ;;  %v53_v7 = vstv %s49_s0 }
  0x12   :  { %vm54_vm0 = vcmp.eq.s32.totalorder %v36_v5, %v53_v7  ;;  %v55_v8 = vstv %s89_s21 }
  0x13   :  { %vm56_vm1 = vcmp.eq.s32.totalorder %v36_v5, %v55_v8  ;;  %v57_v9 = vstv %s90_s22  ;;  %vm48_vm2 = vcmp.lt.s32.totalorder %v45_v4, %v47_v6 }
  0x14   :  { %vm58_vm3 = vcmp.eq.s32.totalorder %v36_v5, %v57_v9  ;;  %v59_v10 = vstv %s91_s23  ;;  %vm61_vm4 = vmor %vm54_vm0, %vm56_vm1 }
  0x15   :  { %vm60_vm5 = vcmp.eq.s32.totalorder %v36_v5, %v59_v10  ;;  %vm62_vm6 = vmor %vm61_vm4, %vm58_vm3 }
  0x16   :  { %vm63_vm7 = vmor %vm62_vm6, %vm60_vm5 }
  0x17   :  { %vm64_vm8 = vmand %vm63_vm7, %vm48_vm2 }
  0x18   :  { %vm65_vm9 = vmpackc.low %vm64_vm8, %vm64_vm8 }
  0x19   :  { %v66_v12 = vsel %vm65_vm9, 16711935, %v164_v11 }
  0x1a   :  { %v68_v13 = vpack.c.b8 %v66_v12, %v66_v12 }
  0x1c   :  { %vm69_vm10 = vnez %v68_v13 }
  0x1d   :  { %v70_v14 = vsel %vm69_vm10, 16843009, %v164_v11 }
  0x1e   :  { %71 = vst [vmem:[#allocation8] sm:$0x3] %v70_v14 }
  0x1f   :  { %82 = dma.vmem_to_hbm [thread:$0]  %s78_s26, 32, %s80_s28, [#allocation7]  }
  0x20   :  { %160 = dma.done.wait [#allocation7], 32  }
  0x21   :  { %161 = vsyncadd [#allocation7], 4294967264 }
  0x22   :  { %87 = vsyncpa [#allocation6], 1 }
  0x23   :  { %88 = vsyncpa [#allocation7], 1 }

</bundles_post_ra>
